<compile_context>
chip_gen: v6e
topology: v6e:2x2x1
jax: 0.10.0
libtpu: 0.0.40
codegen_flags: <defaults>
</compile_context>

<pallas_src>
import jax
import jax.numpy as jnp
from jax.experimental import pallas as pl
from jax.experimental.pallas import tpu as pltpu


def _make_repeat_kernel(r: int, hw: int, lane_dense: bool):
    if lane_dense:
        def _repeat_kernel(x_ref, o_ref):
            # x_ref: (RB, hw) ; o_ref: (RB, r*hw)
            x = x_ref[...]
            # r full-width (lane-dense) stores of the same tile; offsets are
            # static multiples of hw, so no broadcast temp is materialized.
            for k in range(r):
                o_ref[:, pl.ds(k * hw, hw)] = x
    else:
        def _repeat_kernel(x_ref, o_ref):
            # hw not lane-aligned: build the full tile once and issue a single
            # store instead of r masked partial stores.
            o_ref[...] = jnp.tile(x_ref[...], (1, r))
    return _repeat_kernel


def _pick_row_block(rows: int, r: int, hw: int, itemsize: int,
                    target_bytes: int = 2 * 1024 * 1024) -> int:
    """Largest row chunk whose OUTPUT tile stays near `target_bytes`.

    RB is either a multiple of 8 that divides `rows`, or the full row count,
    so the BlockSpec second-minor dim always satisfies the (8,128) rule.
    """
    out_bytes_per_row = r * hw * itemsize
    if rows * out_bytes_per_row <= target_bytes:
        return rows
    cap = max(8, target_bytes // out_bytes_per_row)
    div8 = [d for d in range(8, rows + 1, 8) if rows % d == 0]
    if not div8:
        return rows  # no legal multiple-of-8 divisor -> full dim (always legal)
    fitting = [d for d in div8 if d <= cap]
    return max(fitting) if fitting else min(div8)


def repeat_interleave_channels(x: jax.Array, planes: int) -> jax.Array:
    """Pallas equivalent of Repeat(planes).forward(x) for NCHW inputs."""
    n, c, h, w = x.shape
    assert planes % c == 0, "planes must be divisible by number of channels"
    r = planes // c
    if r == 1:
        return x

    hw = h * w
    rows = n * c
    itemsize = jnp.dtype(x.dtype).itemsize
    rb = _pick_row_block(rows, r, hw, itemsize)
    grid = (rows // rb,)

    # (N, C, H, W) -> (N*C, H*W): free row-major reshape, lane-dense minor dim.
    x_flat = x.reshape(rows, hw)

    in_spec = pl.BlockSpec((rb, hw), lambda i: (i, 0))
    out_spec = pl.BlockSpec((rb, r * hw), lambda i: (i, 0))

    bytes_accessed = (1 + r) * rows * hw * itemsize

    # Double-buffered input + output tiles per step.
    vmem_need = 2 * rb * (hw + r * hw) * itemsize
    compiler_kwargs = dict(dimension_semantics=("parallel",))
    if vmem_need > 12 * 1024 * 1024:
        compiler_kwargs["vmem_limit_bytes"] = min(
            vmem_need + (2 << 20), 100 * 1024 * 1024)

    out_flat = pl.pallas_call(
        _make_repeat_kernel(r, hw, lane_dense=(hw % 128 == 0)),
        out_shape=jax.ShapeDtypeStruct((rows, r * hw), x.dtype),
        grid_spec=pltpu.PrefetchScalarGridSpec(
            num_scalar_prefetch=0,
            grid=grid,
            in_specs=[in_spec],
            out_specs=out_spec,
        ),
        compiler_params=pltpu.CompilerParams(**compiler_kwargs),
        cost_estimate=pl.CostEstimate(
            flops=0, transcendentals=0, bytes_accessed=bytes_accessed),
    )(x_flat)

    # (N*C, r*H*W) row-major == (N, C, r, H, W) -> (N, C*r, H, W): free reshape;
    # output channel j = input channel j // r  (repeat_interleave semantics).
    return out_flat.reshape(n, planes, h, w)


if __name__ == "__main__":
    key = jax.random.PRNGKey(0)
    N, C, H, W = 2, 4, 16, 16
    planes = 8  # repeat_times = planes // C = 2

    x = jax.random.normal(key, (N, C, H, W), dtype=jnp.float32)

    out = repeat_interleave_channels(x, planes)
    out = jax.block_until_ready(out)

    # Reference: jnp.repeat == torch.repeat_interleave semantics.
    ref = jnp.repeat(x, planes // C, axis=1)
    assert out.shape == (N, planes, H, W), out.shape
    assert out.dtype == x.dtype
    assert jnp.array_equal(out, ref), "mismatch vs reference repeat_interleave"

    print("KERNEL_OK")
</pallas_src>

<mosaic_0001>
module attributes {stable_mosaic.version = 11 : i64} {
  func.func @_repeat_kernel(%arg0: i32, %arg1: memref<8x256xf32, #tpu.memory_space<vmem>>, %arg2: memref<8x512xf32, #tpu.memory_space<vmem>>) attributes {dimension_semantics = [#tpu.dimension_semantics<parallel>], iteration_bounds = array<i64: 1>, scalar_prefetch = 0 : i64, scratch_operands = 0 : i64, tpu.core_type = #tpu.core_type<tc>, window_params = [{transform_indices = @transform_0, window_bounds = array<i64: 8, 256>}, {transform_indices = @transform_1, window_bounds = array<i64: 8, 512>}]} {
    %c0 = arith.constant 0 : index
    %c0_0 = arith.constant 0 : index
    %0 = vector.load %arg1[%c0, %c0_0] : memref<8x256xf32, #tpu.memory_space<vmem>>, vector<8x256xf32>
    %c0_1 = arith.constant 0 : index
    %c0_2 = arith.constant 0 : index
    %1 = vector.load %arg2[%c0_1, %c0_2] : memref<8x512xf32, #tpu.memory_space<vmem>>, vector<8x256xf32>
    tpu.vector_store %arg2[%c0_1, %c0_2], %0 {strides = array<i32>} : memref<8x512xf32, #tpu.memory_space<vmem>>, vector<8x256xf32>,
    %c0_3 = arith.constant 0 : index
    %c256 = arith.constant 256 : index
    %2 = vector.load %arg2[%c0_3, %c256] : memref<8x512xf32, #tpu.memory_space<vmem>>, vector<8x256xf32>
    tpu.vector_store %arg2[%c0_3, %c256], %0 {strides = array<i32>} : memref<8x512xf32, #tpu.memory_space<vmem>>, vector<8x256xf32>,
    return
  }
  func.func @transform_0(%arg0: i32) -> (i32, i32) {
    %c0_i32 = arith.constant 0 : i32
    %c0_i32_0 = arith.constant 0 : i32
    return %arg0, %c0_i32 : i32, i32
  }
  func.func @transform_1(%arg0: i32) -> (i32, i32) {
    %c0_i32 = arith.constant 0 : i32
    %c0_i32_0 = arith.constant 0 : i32
    return %arg0, %c0_i32 : i32, i32
  }
}

</mosaic_0001>

<bundles_post_ra>
// kernel: tpu_custom_call.1
= control target key start
LH: loop header
LB: loop body
LE: loop exit
PB: predicated region body
PF: predicated region fallthrough
CT: control target
= control target key end

     0   :  { %6 = vsyncpa [#allocation3], 0  ;;  %s106_s0 = inlined_call_operand.hbm [shape: f32[8,256], index: 0, kind: input, shape index: {}]   ;;  %s107_s1 = inlined_call_operand.hbm [shape: f32[8,512], index: 1, kind: output, shape index: {}]  }
   0x1   :  { %7 = vsyncpa [#allocation4], 0  ;;  %s88_s6 = smov [#allocation2]  }
   0x2   :  { %s14_s7 = sshll.u32 %s88_s6, 4  ;;  %s15_s7 = int_to_ptr.vmem [resolvable:$true] %s14_s7 }
   0x3   :  { %s52_s8 = scalar_lea.vmem %s15_s7, 256  ;;  %p57_p1 = scmp.lt.s32.totalorder %s15_s7, %s15_s7 }
   0x4   :  { %p53_p0 = scmp.ne.s32.totalorder %s15_s7, %s52_s8  ;;  %p58_p2 = scmp.lt.s32.totalorder %s52_s8, %s52_s8 }
   0x6   :  { %p59_p3 = por %p58_p2, %p57_p1 }
   0x8   :  { %p60_p4 = pnand %p59_p3, %p53_p0 }
   0xa   :  { %63 = shalt.err (!%p60_p4)
}
   0xb   :  { %17 = dma.hbm_to_vmem [thread:$0]  %s106_s0, 256, %s15_s7, [#allocation3]  }
   0xc   :  { %84 = dma.done.wait [#allocation3], 256  }
   0xd   :  { %85 = vsyncadd [#allocation3], 4294967040  ;;  %s89_s11 = smov [#allocation5]   ;;  %v21_v0 = vld [vmem:[#allocation2] sm:$0xff]  ;;  %v22_v1 = vld [vmem:[#allocation2 + $0x8] sm:$0xff] }
   0xe   :  { %s33_s12 = sshll.u32 %s89_s11, 4  ;;  %23 = vst [vmem:[#allocation5] sm:$0xff] %v21_v0  ;;  %25 = vst [vmem:[#allocation5 + $0x10] sm:$0xff] %v21_v0  ;;  %s34_s12 = int_to_ptr.vmem [resolvable:$true] %s33_s12 }
   0xf   :  { %24 = vst [vmem:[#allocation5 + $0x8] sm:$0xff] %v22_v1  ;;  %26 = vst [vmem:[#allocation5 + $0x18] sm:$0xff] %v22_v1  ;;  %s64_s13 = scalar_lea.vmem %s34_s12, 512  ;;  %p69_p6 = scmp.lt.s32.totalorder %s34_s12, %s34_s12 }
  0x10   :  { %p65_p5 = scmp.ne.s32.totalorder %s34_s12, %s64_s13  ;;  %p70_p7 = scmp.lt.s32.totalorder %s64_s13, %s64_s13 }
  0x12   :  { %p71_p8 = por %p70_p7, %p69_p6 }
  0x14   :  { %p72_p9 = pnand %p71_p8, %p65_p5 }
  0x16   :  { %75 = shalt.err (!%p72_p9)
}
  0x17   :  { %36 = dma.vmem_to_hbm [thread:$0]  %s34_s12, 512, %s107_s1, [#allocation4]  }
  0x18   :  { %86 = dma.done.wait [#allocation4], 512  }
  0x19   :  { %87 = vsyncadd [#allocation4], 4294966784 }
  0x1a   :  { %40 = vsyncpa [#allocation3], 1 }
  0x1b   :  { %41 = vsyncpa [#allocation4], 1 }

</bundles_post_ra>
